<compile_context>
chip_gen: v6e
topology: v6e:2x2x1
jax: 0.10.0
libtpu: 0.0.40
codegen_flags: <defaults>
</compile_context>

<pallas_src>
import jax
import jax.numpy as jnp
from jax.experimental import pallas as pl
from jax.experimental.pallas import tpu as pltpu


def _attn_kernel(g_ref, x_ref, wg_ref, wx_ref, b_ref, wp_ref, bp_ref, out_ref):
    # g_ref: (F_g, T), x_ref: (F_l, T) -- channels on sublanes, pixels on lanes.
    g = g_ref[...]
    x = x_ref[...]

    # Fused branch:  h = relu(Wg'@g + Wx'@x + b')   (BN affine pre-folded)
    h = jnp.dot(wg_ref[...], g, preferred_element_type=jnp.float32)
    h = h + jnp.dot(wx_ref[...], x, preferred_element_type=jnp.float32)
    h = jnp.maximum(h + b_ref[...], 0.0)                          # (F_int, T)

    # psi = sigmoid(wp'·h + bp')  -- VPU mul + sublane reduce (no 1-col MXU push)
    p = jnp.sum(h * wp_ref[...], axis=0, keepdims=True) + bp_ref[0]   # (1, T)
    p = 1.0 / (1.0 + jnp.exp(-p))                                 # sigmoid (EUP)

    # gated output: x * psi (psi broadcast over channels / sublanes)
    out_ref[...] = (x.astype(jnp.float32) * p).astype(out_ref.dtype)


def _pick_tile(HW, F_g, F_l, F_int, in_bytes, out_bytes,
               budget_bytes=24 * 1024 * 1024):
    """Largest pixel tile (multiple of 128) whose double-buffered working set
    fits the VMEM budget, capped at the 128-padded H*W."""
    hw128 = pl.cdiv(HW, 128) * 128
    # weights / biases (constant block index, but count double buffers to be safe)
    const_bytes = 2 * 4 * (F_int * F_g + F_int * F_l + 2 * F_int)
    # per-pixel-column bytes: g + x inputs and the gated output, double-buffered
    per_pix = 2 * ((F_g + F_l) * in_bytes + F_l * out_bytes)
    tile = 128
    for t in (2048, 1024, 512, 256, 128):
        if const_bytes + per_pix * t <= budget_bytes:
            tile = t
            break
    return min(tile, hw128)


def attention_block(g, x, params, *, tile_p=None):
    """g: (N, F_g, H, W), x: (N, F_l, H, W)  (NCHW, like PyTorch)."""
    N, F_g, H, W = g.shape
    _, F_l, _, _ = x.shape
    F_int = params["wg"].shape[1]
    HW = H * W

    in_bytes = jnp.dtype(x.dtype).itemsize
    if tile_p is None:
        tile = _pick_tile(HW, F_g, F_l, F_int, in_bytes, in_bytes)
    else:
        tile = max(128, (int(tile_p) // 128) * 128)
        tile = min(tile, pl.cdiv(HW, 128) * 128)
    HW_pad = pl.cdiv(HW, tile) * tile

    # NCHW -> (N, C, H*W): free reshape, no transpose.
    g3 = g.reshape(N, F_g, HW)
    x3 = x.reshape(N, F_l, HW)
    if HW_pad != HW:
        pad = HW_pad - HW
        g3 = jnp.pad(g3, ((0, 0), (0, 0), (0, pad)))
        x3 = jnp.pad(x3, ((0, 0), (0, 0), (0, pad)))

    eps = 1e-5

    def bn_fold(gamma, beta, mean, var):
        scale = gamma / jnp.sqrt(var + eps)
        shift = beta - mean * scale
        return scale, shift

    sg, shg = bn_fold(params["bn_g_gamma"], params["bn_g_beta"],
                      params["bn_g_mean"], params["bn_g_var"])
    sx, shx = bn_fold(params["bn_x_gamma"], params["bn_x_beta"],
                      params["bn_x_mean"], params["bn_x_var"])
    sp, shp = bn_fold(params["bn_p_gamma"], params["bn_p_beta"],
                      params["bn_p_mean"], params["bn_p_var"])

    # Fold BN into weights/bias; weights stored channels-first: (F_int, C_in).
    wg_f = (params["wg"].astype(jnp.float32) * sg[None, :]).T        # (F_int, F_g)
    wx_f = (params["wx"].astype(jnp.float32) * sx[None, :]).T        # (F_int, F_l)
    b_f = ((params["bg"] * sg + shg) + (params["bx"] * sx + shx))
    b_f = b_f.astype(jnp.float32).reshape(F_int, 1)
    wp_f = (params["wp"][:, 0].astype(jnp.float32) * sp[0]).reshape(F_int, 1)
    bp_f = (params["bp"] * sp + shp).astype(jnp.float32).reshape(1)  # SMEM scalar

    # If activations arrive in bf16, feed the MXU bf16 weights (f32 accumulate).
    if x.dtype == jnp.bfloat16:
        wg_f = wg_f.astype(jnp.bfloat16)
        wx_f = wx_f.astype(jnp.bfloat16)

    grid = (N, HW_pad // tile)
    pix = lambda c: pl.BlockSpec((None, c, tile), lambda n, p: (n, 0, p))
    full = lambda shp: pl.BlockSpec(shp, lambda n, p: (0, 0))

    out3 = pl.pallas_call(
        _attn_kernel,
        out_shape=jax.ShapeDtypeStruct((N, F_l, HW_pad), x.dtype),
        grid_spec=pltpu.PrefetchScalarGridSpec(
            num_scalar_prefetch=0,
            grid=grid,
            in_specs=[
                pix(F_g),                                   # g tile
                pix(F_l),                                   # x tile
                full((F_int, F_g)),                         # folded Wg
                full((F_int, F_l)),                         # folded Wx
                full((F_int, 1)),                           # fused branch bias
                full((F_int, 1)),                           # folded psi weight
                pl.BlockSpec(memory_space=pltpu.MemorySpace.SMEM),  # psi bias
            ],
            out_specs=pix(F_l),
        ),
        compiler_params=pltpu.CompilerParams(
            dimension_semantics=("parallel", "parallel"),
            vmem_limit_bytes=32 * 1024 * 1024),
    )(g3, x3, wg_f, wx_f, b_f, wp_f, bp_f)

    if HW_pad != HW:
        out3 = out3[:, :, :HW]
    return out3.reshape(N, F_l, H, W)


def _reference(g, x, params):
    """Pure-JAX reference of the same (eval-mode BN) forward."""
    eps = 1e-5
    gm = jnp.transpose(g, (0, 2, 3, 1)).astype(jnp.float32)
    xm = jnp.transpose(x, (0, 2, 3, 1)).astype(jnp.float32)

    def bn(v, gamma, beta, mean, var):
        return (v - mean) / jnp.sqrt(var + eps) * gamma + beta

    g1 = bn(gm @ params["wg"] + params["bg"],
            params["bn_g_gamma"], params["bn_g_beta"],
            params["bn_g_mean"], params["bn_g_var"])
    x1 = bn(xm @ params["wx"] + params["bx"],
            params["bn_x_gamma"], params["bn_x_beta"],
            params["bn_x_mean"], params["bn_x_var"])
    h = jnp.maximum(g1 + x1, 0.0)
    p = bn(h @ params["wp"] + params["bp"],
           params["bn_p_gamma"], params["bn_p_beta"],
           params["bn_p_mean"], params["bn_p_var"])
    p = jax.nn.sigmoid(p)
    out = xm * p
    return jnp.transpose(out, (0, 3, 1, 2)).astype(x.dtype)


def init_params(key, F_g, F_l, F_int):
    ks = jax.random.split(key, 12)
    p = {
        # conv weights stored as (C_in, C_out)
        "wg": 0.1 * jax.random.normal(ks[0], (F_g, F_int), jnp.float32),
        "bg": 0.1 * jax.random.normal(ks[1], (F_int,), jnp.float32),
        "wx": 0.1 * jax.random.normal(ks[2], (F_l, F_int), jnp.float32),
        "bx": 0.1 * jax.random.normal(ks[3], (F_int,), jnp.float32),
        "wp": 0.1 * jax.random.normal(ks[4], (F_int, 1), jnp.float32),
        "bp": 0.1 * jax.random.normal(ks[5], (1,), jnp.float32),
        # BatchNorm (eval mode) params / running stats
        "bn_g_gamma": 1.0 + 0.05 * jax.random.normal(ks[6], (F_int,), jnp.float32),
        "bn_g_beta": 0.05 * jax.random.normal(ks[7], (F_int,), jnp.float32),
        "bn_g_mean": 0.05 * jax.random.normal(ks[8], (F_int,), jnp.float32),
        "bn_g_var": jnp.abs(1.0 + 0.05 * jax.random.normal(ks[9], (F_int,), jnp.float32)),
        "bn_x_gamma": 1.0 + 0.05 * jax.random.normal(ks[10], (F_int,), jnp.float32),
        "bn_x_beta": 0.05 * jax.random.normal(ks[11], (F_int,), jnp.float32),
        "bn_x_mean": jnp.zeros((F_int,), jnp.float32),
        "bn_x_var": jnp.ones((F_int,), jnp.float32),
        "bn_p_gamma": jnp.ones((1,), jnp.float32),
        "bn_p_beta": jnp.zeros((1,), jnp.float32),
        "bn_p_mean": jnp.zeros((1,), jnp.float32),
        "bn_p_var": jnp.ones((1,), jnp.float32),
    }
    return p


if __name__ == "__main__":
    key = jax.random.PRNGKey(0)
    N, F_g, F_l, F_int, H, W = 2, 8, 8, 16, 16, 16

    kg, kx, kp = jax.random.split(key, 3)
    g = jax.random.normal(kg, (N, F_g, H, W), jnp.float32)
    x = jax.random.normal(kx, (N, F_l, H, W), jnp.float32)
    params = init_params(kp, F_g, F_l, F_int)

    out = attention_block(g, x, params)
    out = jax.block_until_ready(out)

    ref = _reference(g, x, params)
    assert out.shape == (N, F_l, H, W)
    assert jnp.allclose(out, ref, atol=1e-4, rtol=1e-4), "mismatch vs reference"

    print("KERNEL_OK")
</pallas_src>

<mosaic_0001>
module attributes {stable_mosaic.version = 11 : i64} {
  func.func @_attn_kernel(%arg0: i32, %arg1: i32, %arg2: memref<1x8x256xf32, #tpu.memory_space<vmem>>, %arg3: memref<1x8x256xf32, #tpu.memory_space<vmem>>, %arg4: memref<16x8xf32, #tpu.memory_space<vmem>>, %arg5: memref<16x8xf32, #tpu.memory_space<vmem>>, %arg6: memref<16x1xf32, #tpu.memory_space<vmem>>, %arg7: memref<16x1xf32, #tpu.memory_space<vmem>>, %arg8: memref<1xf32, #tpu.memory_space<smem>>, %arg9: memref<1x8x256xf32, #tpu.memory_space<vmem>>) attributes {dimension_semantics = [#tpu.dimension_semantics<parallel>, #tpu.dimension_semantics<parallel>], iteration_bounds = array<i64: 2, 1>, scalar_prefetch = 0 : i64, scratch_operands = 0 : i64, tpu.core_type = #tpu.core_type<tc>, window_params = [{transform_indices = @transform_0, window_bounds = array<i64: 1, 8, 256>}, {transform_indices = @transform_1, window_bounds = array<i64: 1, 8, 256>}, {pipeline_mode = #tpu.pipeline_mode<synchronous>, transform_indices = @transform_2, window_bounds = array<i64: 16, 8>}, {pipeline_mode = #tpu.pipeline_mode<synchronous>, transform_indices = @transform_3, window_bounds = array<i64: 16, 8>}, {pipeline_mode = #tpu.pipeline_mode<synchronous>, transform_indices = @transform_4, window_bounds = array<i64: 16, 1>}, {pipeline_mode = #tpu.pipeline_mode<synchronous>, transform_indices = @transform_5, window_bounds = array<i64: 16, 1>}, {transform_indices = @transform_6, window_bounds = array<i64: 1>}, {transform_indices = @transform_7, window_bounds = array<i64: 1, 8, 256>}]} {
    %c0 = arith.constant 0 : index
    %c0_0 = arith.constant 0 : index
    %c0_1 = arith.constant 0 : index
    %0 = vector.load %arg2[%c0, %c0_0, %c0_1] : memref<1x8x256xf32, #tpu.memory_space<vmem>>, vector<1x8x256xf32>
    %1 = vector.shape_cast %0 : vector<1x8x256xf32> to vector<8x256xf32>
    %c0_2 = arith.constant 0 : index
    %c0_3 = arith.constant 0 : index
    %c0_4 = arith.constant 0 : index
    %2 = vector.load %arg3[%c0_2, %c0_3, %c0_4] : memref<1x8x256xf32, #tpu.memory_space<vmem>>, vector<1x8x256xf32>
    %3 = vector.shape_cast %2 : vector<1x8x256xf32> to vector<8x256xf32>
    %c0_5 = arith.constant 0 : index
    %c0_6 = arith.constant 0 : index
    %4 = vector.load %arg4[%c0_5, %c0_6] : memref<16x8xf32, #tpu.memory_space<vmem>>, vector<16x8xf32>
    %cst = arith.constant dense<0.000000e+00> : vector<16x256xf32>
    %5 = tpu.matmul %4, %1, %cst {dimension_numbers = #tpu.dot_dimension_numbers<[1], [0], [0], [1], [0, 0, 1, 1], [], []>} : vector<16x8xf32>, vector<8x256xf32>, vector<16x256xf32> -> vector<16x256xf32>
    %c0_7 = arith.constant 0 : index
    %c0_8 = arith.constant 0 : index
    %6 = vector.load %arg5[%c0_7, %c0_8] : memref<16x8xf32, #tpu.memory_space<vmem>>, vector<16x8xf32>
    %cst_9 = arith.constant dense<0.000000e+00> : vector<16x256xf32>
    %7 = tpu.matmul %6, %3, %cst_9 {dimension_numbers = #tpu.dot_dimension_numbers<[1], [0], [0], [1], [0, 0, 1, 1], [], []>} : vector<16x8xf32>, vector<8x256xf32>, vector<16x256xf32> -> vector<16x256xf32>
    %8 = arith.addf %5, %7 : vector<16x256xf32>
    %c0_10 = arith.constant 0 : index
    %c0_11 = arith.constant 0 : index
    %9 = vector.load %arg6[%c0_10, %c0_11] : memref<16x1xf32, #tpu.memory_space<vmem>>, vector<16x1xf32>
    %10 = vector.broadcast %9 : vector<16x1xf32> to vector<16x256xf32>
    %11 = arith.addf %8, %10 : vector<16x256xf32>
    %cst_12 = arith.constant 0.000000e+00 : f32
    %12 = vector.broadcast %cst_12 : f32 to vector<16x256xf32>
    %13 = arith.maximumf %11, %12 : vector<16x256xf32>
    %c0_13 = arith.constant 0 : index
    %c0_14 = arith.constant 0 : index
    %14 = vector.load %arg7[%c0_13, %c0_14] : memref<16x1xf32, #tpu.memory_space<vmem>>, vector<16x1xf32>
    %15 = vector.broadcast %14 : vector<16x1xf32> to vector<16x256xf32>
    %16 = arith.mulf %13, %15 : vector<16x256xf32>
    %cst_15 = arith.constant dense<0.000000e+00> : vector<256xf32>
    %17 = vector.multi_reduction <add>, %16, %cst_15 [0] : vector<16x256xf32> to vector<256xf32>
    %18 = vector.shape_cast %17 : vector<256xf32> to vector<1x256xf32>
    %c0_16 = arith.constant 0 : index
    %19 = memref.load %arg8[%c0_16] : memref<1xf32, #tpu.memory_space<smem>>
    %20 = vector.broadcast %19 : f32 to vector<1x256xf32>
    %21 = arith.addf %18, %20 : vector<1x256xf32>
    %cst_17 = arith.constant 0.000000e+00 : f32
    %22 = vector.broadcast %cst_17 : f32 to vector<1x256xf32>
    %23 = arith.subf %22, %21 : vector<1x256xf32>
    %24 = math.exp %23 : vector<1x256xf32>
    %cst_18 = arith.constant 1.000000e+00 : f32
    %25 = vector.broadcast %cst_18 : f32 to vector<1x256xf32>
    %26 = arith.addf %25, %24 : vector<1x256xf32>
    %cst_19 = arith.constant 1.000000e+00 : f32
    %27 = vector.broadcast %cst_19 : f32 to vector<1x256xf32>
    %28 = arith.divf %27, %26 : vector<1x256xf32>
    %29 = vector.broadcast %28 : vector<1x256xf32> to vector<8x256xf32>
    %30 = arith.mulf %3, %29 : vector<8x256xf32>
    %c0_20 = arith.constant 0 : index
    %c0_21 = arith.constant 0 : index
    %c0_22 = arith.constant 0 : index
    %31 = vector.load %arg9[%c0_20, %c0_21, %c0_22] : memref<1x8x256xf32, #tpu.memory_space<vmem>>, vector<1x8x256xf32>
    %32 = vector.shape_cast %31 : vector<1x8x256xf32> to vector<8x256xf32>
    %33 = vector.shape_cast %30 : vector<8x256xf32> to vector<1x8x256xf32>
    tpu.vector_store %arg9[%c0_20, %c0_21, %c0_22], %33 {strides = array<i32>} : memref<1x8x256xf32, #tpu.memory_space<vmem>>, vector<1x8x256xf32>,
    return
  }
  func.func @transform_0(%arg0: i32, %arg1: i32) -> (i32, i32, i32) {
    %c0_i32 = arith.constant 0 : i32
    %c0_i32_0 = arith.constant 0 : i32
    return %arg0, %c0_i32, %arg1 : i32, i32, i32
  }
  func.func @transform_1(%arg0: i32, %arg1: i32) -> (i32, i32, i32) {
    %c0_i32 = arith.constant 0 : i32
    %c0_i32_0 = arith.constant 0 : i32
    return %arg0, %c0_i32, %arg1 : i32, i32, i32
  }
  func.func @transform_2(%arg0: i32, %arg1: i32) -> (i32, i32) {
    %c0_i32 = arith.constant 0 : i32
    %c0_i32_0 = arith.constant 0 : i32
    %c0_i32_1 = arith.constant 0 : i32
    return %c0_i32, %c0_i32_0 : i32, i32
  }
  func.func @transform_3(%arg0: i32, %arg1: i32) -> (i32, i32) {
    %c0_i32 = arith.constant 0 : i32
    %c0_i32_0 = arith.constant 0 : i32
    %c0_i32_1 = arith.constant 0 : i32
    return %c0_i32, %c0_i32_0 : i32, i32
  }
  func.func @transform_4(%arg0: i32, %arg1: i32) -> (i32, i32) {
    %c0_i32 = arith.constant 0 : i32
    %c0_i32_0 = arith.constant 0 : i32
    %c0_i32_1 = arith.constant 0 : i32
    return %c0_i32, %c0_i32_0 : i32, i32
  }
  func.func @transform_5(%arg0: i32, %arg1: i32) -> (i32, i32) {
    %c0_i32 = arith.constant 0 : i32
    %c0_i32_0 = arith.constant 0 : i32
    %c0_i32_1 = arith.constant 0 : i32
    return %c0_i32, %c0_i32_0 : i32, i32
  }
  func.func @transform_6(%arg0: i32, %arg1: i32) -> i32 {
    %c0_i32 = arith.constant 0 : i32
    %c0_i32_0 = arith.constant 0 : i32
    return %c0_i32 : i32
  }
  func.func @transform_7(%arg0: i32, %arg1: i32) -> (i32, i32, i32) {
    %c0_i32 = arith.constant 0 : i32
    %c0_i32_0 = arith.constant 0 : i32
    return %arg0, %c0_i32, %arg1 : i32, i32, i32
  }
}

</mosaic_0001>

<bundles_post_ra>
// kernel: tpu_custom_call.1
= control target key start
LH: loop header
LB: loop body
LE: loop exit
PB: predicated region body
PF: predicated region fallthrough
CT: control target
= control target key end

     0   :  { %s1052_s0 = inlined_call_operand.vmem [shape: f32[2,8,256], index: 0, kind: input, shape index: {}]   ;;  %s1053_s1 = inlined_call_operand.vmem [shape: f32[2,8,256], index: 1, kind: input, shape index: {}]   ;;  %s1054_s2 = inlined_call_operand.vmem [shape: f32[16,8], index: 2, kind: input, shape index: {}]   ;;  %s1055_s3 = inlined_call_operand.vmem [shape: f32[16,8], index: 3, kind: input, shape index: {}]   ;;  %s1056_s4 = inlined_call_operand.vmem [shape: f32[16,1], index: 4, kind: input, shape index: {}]   ;;  %s1057_s5 = inlined_call_operand.vmem [shape: f32[16,1], index: 5, kind: input, shape index: {}]   ;;  %s1058_s6 = inlined_call_operand.<no memory space> [shape: f32[1], index: 6, kind: input, shape index: {}]   ;;  %s1059_s7 = inlined_call_operand.hbm [shape: f32[2,8,256], index: 7, kind: output, shape index: {}]  }
   0x1   :  { %12 = sst [smem:[#allocation2]] %s1058_s6 }
   0x2   :  { %13 = vsyncpa [#allocation4], 0 }
   0x3   :  { %15 = vsyncpa [#allocation4 + $0x1], 0  ;;  %s914_s26 = smov 0   ;;  %s916_s27 = smov 0  }
   0x4   :  { %s918_s28 = smov 0   ;;  %s920_s29 = smov 0  }
   0x5   :  { %s922_s30 = smov 0   ;;  %s924_s8 = smov 0  }
   0x6 LB: > { %s701_s6 = sadd.s32 4294967295, %s866_s8   ;;  %s702_s9 = sadd.s32 4294967294, %s866_s8   ;;  %s866_s8 = sphi %s924_s8, %s21_s8   ;;  %s862_s30 = sphi %s922_s30, %s1066_s30   ;;  %s858_s29 = sphi %s920_s29, %s1065_s29   ;;  %s854_s28 = sphi %s918_s28, %s1064_s28   ;;  %s850_s27 = sphi %s916_s27, %s1063_s27   ;;  %s846_s26 = sphi %s914_s26, %s1062_s26  }
   0x7   : > { %s33_s10 = sadd.s32 1, %s862_s30  ;;  %s203_s11 = sadd.s32 1, %s854_s28 }
   0x8   : > { %p35_p0 = scmp.ge.s32.totalorder %s33_s10, 2  ;;  %p213_p1 = scmp.ne.s32.totalorder %s854_s28, %s850_s27 }
   0x9   : > { %p214_p2 = scmp.eq.s32.totalorder %s701_s6, 1  ;;  %p219_p3 = scmp.ne.s32.totalorder %s850_s27, %s846_s26 }
   0xa   : > { %s1068_s10 = smov (%p35_p0, %s33_s10), 0  ;;  %p220_p5 = scmp.eq.s32.totalorder %s702_s9, 1 }
   0xb   : > { %p954_p4 = por %p214_p2, %p213_p1  ;;  %s198_s13 = ssub.s32 %s862_s30, %s1068_s10 }
   0xc   : > { %p705_p6 = scmp.ge.s32.totalorder %s866_s8, 1  ;;  %p201_p7 = scmp.eq.s32.totalorder %s198_s13, 0 }
   0xd   : > { %p961_p8 = por %p220_p5, %p219_p3  ;;  %p279_p9 = scmp.lt.s32.totalorder %s866_s8, 3 }
   0xe   : > { %s967_s15 = scalar_select %p201_p7, %s854_s28, %s203_s11  }
   0xf   : > { %p280_p10 = pnand %p705_p6, %p279_p9 }
  0x10   : > { %p325_p11 = scmp.lt.s32.totalorder (!%p280_p10), %s858_s29, 1  ;;  %s570_s6 = sld [smem:[#allocation2]] (!%p280_p10) }
  0x11   : > { %283 = sbr.rel (%p280_p10) target bundleno = 302 (0x12e), region = 48  ;;  %s722_s13 = sshll.u32 (!%p280_p10), %s858_s29, 8 }
  0x16   : > { %v868_v0 = vmov 0.0   ;;  %v520_v1 = vld [vmem:[%s1056_s4] sm:$0xff]  ;;  %s326_s20 = scalar_select %p325_p11, %s858_s29, 1  ;;  %v869_v3 = vmov 0   ;;  %vm353_vm0 = vcmask 64512   ;;  %v521_v10 = vld [vmem:[%s1056_s4 + $0x8] sm:$0xff]  ;;  %v571_v53 = vstv %s570_s6 }
  0x17   : > { %424 = vmatprep.mubr.f32.mxu0 %v868_v0  ;;  %507 = vmatprep.mubr.f32.mxu1 %v868_v0  ;;  %v540_v2 = vld [vmem:[%s1057_s5] sm:$0xff]  ;;  %v541_v11 = vld [vmem:[%s1057_s5 + $0x8] sm:$0xff]  ;;  %s870_s29 = smov [#allocation3]  }
  0x18   : > { %780 = vset.pattern.permute.xlu0 %v869_v3  ;;  %781 = vset.pattern.permute.xlu1 %v869_v3  ;;  %s720_s21 = sshll.u32 %s326_s20, 4  ;;  %v351_v4 = vld [vmem:[%s1055_s3] sm:$0xff]  ;;  %v352_v12 = vld [vmem:[%s1055_s3 + $0x8] sm:$0xff]  ;;  %s605_s20 = scalar_lea.hbm %s1059_s7, %s722_s13 }
  0x19   : > { %524 = vperm.xlu0 %780, %v520_v1   ;;  %544 = vperm.xlu1 %781, %v540_v2   ;;  %s342_s24 = scalar_lea.vmem %s1053_s1, %s720_s21  ;;  %s332_s9 = scalar_lea.vmem %s1052_s0, %s720_s21  ;;  %v349_v5 = vld [vmem:[%s1054_s2] sm:$0xff]  ;;  %v350_v13 = vld [vmem:[%s1054_s2 + $0x8] sm:$0xff] }
  0x1a   : > { %v989_v6 = vld [vmem:[%s342_s24 + $0x8] sm:$0xff]  ;;  %v991_v8 = vld [vmem:[%s342_s24] sm:$0xff]  ;;  %s794_s23 = sshll.u32 %s870_s29, 4  ;;  %s795_s23 = int_to_ptr.vmem [resolvable:$false] %s794_s23 }
  0x1b   : > { %v346_v7 = vld [vmem:[%s332_s9 + $0x8] sm:$0xff]  ;;  %390 = vmatprep.subr.mxu0 %v989_v6  ;;  %v345_v9 = vld [vmem:[%s332_s9] sm:$0xff]  ;;  %s321_s9 = sand.u32 1, %s850_s27   ;;  %s796_s24 = scalar_lea.vmem %s795_s23, 512 }
  0x1c   : > { %473 = vmatprep.subr.mxu1 %v346_v7  ;;  %391 = vmatpush1.msra.mxu0 %v991_v8  ;;  %s706_s11 = sshll.u32 %s321_s9, 4  ;;  %s591_s21 = scalar_lea.sflag [#allocation4], %s321_s9 }
  0x1d   : > { %474 = vmatpush1.msra.mxu1 %v345_v9  ;;  %711 = vmatmul.mubr.msk.f32.vlgmr.msra.gmra.mxu0 %vm353_vm0, %v351_v4  ;;  %s323_s16 = scalar_lea.vmem [#allocation3], %s706_s11 }
  0x1e   : > { %713 = vmatmul.mubr.msk.f32.vlgmr.msra.gmra.mxu1 %vm353_vm0, %v349_v5  ;;  %430 = vmatprep.mubr.f32.mxu0 %v868_v0  ;;  %s607_s17 = sshll.u32 %s323_s16, 4  ;;  %s608_s17 = int_to_ptr.vmem [resolvable:$true] %s607_s17 }
  0x1f   : > { %513 = vmatprep.mubr.f32.mxu1 %v868_v0  ;;  %529 = vperm.xlu0 %780, %v521_v10   ;;  %s790_s22 = scalar_lea.vmem %s608_s17, 256  ;;  %p797_p1 = scmp.lt.s32.totalorder %s608_s17, %s795_s23 }
  0x20   : > { %549 = vperm.xlu1 %781, %v541_v11   ;;  %p791_p12 = scmp.ne.s32.totalorder %s608_s17, %s790_s22  ;;  %p798_p2 = scmp.lt.s32.totalorder %s796_s24, %s790_s22 }
  0x21   : > { %712 = vmatmul.mubr.msk.f32.gmra.mxu0 %vm353_vm0, %v352_v12 }
  0x22   : > { %714 = vmatmul.mubr.msk.f32.gmra.mxu1 %vm353_vm0, %v350_v13  ;;  %p792_p13 = pnand %p791_p12, %p954_p4  ;;  %p799_p3 = por %p798_p2, %p797_p1 }
  0x24   : > { %p793_p0 = pneg %p792_p13 }
  0x26   : > { %p800_p5 = pnand %p799_p3, %p793_p0 }
  0x94   : > { %v525_v14 = vpop.permute.xlu0 %524  ;;  %v545_v22 = vpop.permute.xlu1 %544 }
  0x9a   : > { %v530_v26 = vpop.permute.xlu0 %529 }
  0x9b   : > { %v550_v36 = vpop.permute.xlu1 %549 }
  0xdd   : > { %v426_v15 = vpop.f32.mrf.mxu0 }
  0xde   : > { %v509_v16 = vpop.f32.mrf.mxu1 }
  0xdf   : > { %v510_v17 = vadd.f32 %v509_v16, %v426_v15  ;;  %v428_v18 = vpop.f32.mrf.mxu0 }
  0xe0   : > { %v511_v19 = vpop.f32.mrf.mxu1 }
  0xe1   : > { %v532_v20 = vadd.f32 %v525_v14, %v510_v17  ;;  %v512_v21 = vadd.f32 %v511_v19, %v428_v18  ;;  %v432_v23 = vpop.f32.mrf.mxu0 }
  0xe2   : > { %v515_v24 = vpop.f32.mrf.mxu1 }
  0xe3   : > { %v533_v25 = vadd.f32 %v525_v14, %v512_v21  ;;  %v516_v27 = vadd.f32 %v515_v24, %v432_v23  ;;  %v434_v28 = vpop.f32.mrf.mxu0  ;;  %v536_v30 = vmax.f32 %v532_v20, 0.0 }
  0xe4   : > { %v517_v29 = vpop.f32.mrf.mxu1 }
  0xe5   : > { %v534_v31 = vadd.f32 %v530_v26, %v516_v27  ;;  %v518_v32 = vadd.f32 %v517_v29, %v434_v28  ;;  %v537_v33 = vmax.f32 %v533_v25, 0.0  ;;  %v552_v37 = vmul.f32 %v545_v22, %v536_v30 }
  0xe7   : > { %v535_v34 = vadd.f32 %v530_v26, %v518_v32  ;;  %v538_v35 = vmax.f32 %v534_v31, 0.0  ;;  %v553_v40 = vmul.f32 %v545_v22, %v537_v33 }
  0xe9   : > { %v539_v38 = vmax.f32 %v535_v34, 0.0  ;;  %v554_v39 = vmul.f32 %v550_v36, %v538_v35 }
  0xeb   : > { %v555_v41 = vmul.f32 %v550_v36, %v539_v38  ;;  %v556_v42 = vadd.f32 %v554_v39, %v552_v37 }
  0xed   : > { %v557_v43 = vrot.slane %v556_v42, 4  ;;  %v563_v44 = vadd.f32 %v555_v41, %v553_v40 }
  0xef   : > { %v558_v45 = vadd.f32 %v557_v43, %v556_v42  ;;  %v564_v46 = vrot.slane %v563_v44, 4 }
  0xf1   : > { %v559_v47 = vrot.slane %v558_v45, 2  ;;  %v565_v48 = vadd.f32 %v564_v46, %v563_v44 }
  0xf3   : > { %v560_v49 = vadd.f32 %v559_v47, %v558_v45  ;;  %v566_v50 = vrot.slane %v565_v48, 2 }
  0xf5   : > { %v561_v51 = vrot.slane %v560_v49, 1  ;;  %v567_v52 = vadd.f32 %v566_v50, %v565_v48 }
  0xf7   : > { %v562_v54 = vadd.f32 %v561_v51, %v560_v49  ;;  %v568_v55 = vrot.slane %v567_v52, 1 }
  0xf9   : > { %v569_v56 = vadd.f32 %v568_v55, %v567_v52  ;;  %v572_v57 = vadd.f32 %v571_v53, %v562_v54 }
  0xfb   : > { %v573_v58 = vadd.f32 %v571_v53, %v569_v56  ;;  %v574_v59 = vsub.f32 0.0, %v572_v57 }
  0xfd   : > { %v575_v60 = vsub.f32 0.0, %v573_v58  ;;  %v576_v61 = vmul.f32 1.442695, %v574_v59 }
  0xff   : > { %782 = vpow2.f32 %v576_v61  ;;  %v578_v62 = vmul.f32 1.442695, %v575_v60 }
 0x101   : > { %784 = vpow2.f32 %v578_v62 }
 0x10c   : > { %v783_v63 = vpop.eup %782 }
 0x10d   : > { %v580_v0 = vadd.f32 1.0, %v783_v63 }
 0x10e   : > { %v785_v1 = vpop.eup %784 }
 0x10f   : > { %v581_v2 = vadd.f32 1.0, %v785_v1  ;;  %786 = vrcp.f32 %v580_v0 }
 0x111   : > { %788 = vrcp.f32 %v581_v2 }
 0x11c   : > { %v787_v3 = vpop.eup %786 }
 0x11d   : > { %v586_v4 = vmul.f32 %v787_v3, %v991_v8 }
 0x11e   : > { %v789_v5 = vpop.eup %788 }
 0x11f   : > { %v587_v7 = vmul.f32 %v789_v5, %v989_v6  ;;  %588 = vst [vmem:[%s323_s16] sm:$0xff] %v586_v4 }
 0x121   : > { %589 = vst [vmem:[%s323_s16 + $0x8] sm:$0xff] %v587_v7 }
 0x122   : > { %803 = shalt.err (!%p800_p5)
}
 0x123   : > { %s804_s25 = scalar_lea.hbm %s605_s20, 256  ;;  %s808_s11 = scalar_lea.hbm %s1059_s7, 512 }
 0x124   : > { %p805_p6 = scmp.ne.s32.totalorder %s605_s20, %s804_s25  ;;  %p809_p10 = scmp.lt.s32.totalorder %s605_s20, %s1059_s7 }
 0x125   : > { %p810_p11 = scmp.lt.s32.totalorder %s808_s11, %s804_s25 }
 0x126   : > { %p806_p7 = pnand %p805_p6, %p954_p4 }
 0x127   : > { %p811_p12 = por %p810_p11, %p809_p10 }
 0x128   : > { %p807_p9 = pneg %p806_p7 }
 0x12a   : > { %p812_p13 = pnand %p811_p12, %p807_p9 }
 0x12c   : > { %815 = shalt.err (!%p812_p13)
}
 0x12d   : > { %723 = dma.vmem_to_hbm [thread:$0]  (%p954_p4), %s608_s17, 256, %s605_s20, %s591_s21  }
 0x12e PF: > { %p729_p0 = scmp.ge.s32.totalorder %s866_s8, 2  ;;  %s619_s18 = sand.u32 1, %s846_s26  }
 0x12f   : > { %s620_s19 = scalar_lea.sflag [#allocation4], %s619_s18 }
 0x130   : > { %p726_p1 = pnand %p729_p0, %p961_p8 }
 0x132   : > { %p727_p2 = pneg %p726_p1 }
 0x134   : > { %841 = dma.done.wait (%p727_p2), %s620_s19, 256  }
 0x135   : > { %843 = vsyncadd (%p727_p2), %s620_s19, 4294967040  ;;  %s21_s8 = sadd.s32 1, %s866_s8   ;;  %s1062_s26 = smov %s850_s27 }
 0x136   : > { %p18_p3 = scmp.ge.s32.totalorder %s21_s8, 4   ;;  %s1063_s27 = smov %s854_s28 }
 0x137   : > { %s1064_s28 = smov %s967_s15  ;;  %s1065_s29 = smov %s862_s30 }
 0x138   : > { %s1066_s30 = smov %s1068_s10  ;;  %20 = sbr.rel (!%p18_p3) target bundleno = 6 (0x6), region = 86 }
 0x13d   :  { %625 = vsyncpa [#allocation4], 1 }
 0x13e   :  { %627 = vsyncpa [#allocation4 + $0x1], 1 }

</bundles_post_ra>
